<compile_context>
chip_gen: v5e
topology: v5e:2x2
jax: 0.10.0
libtpu: 0.0.40
codegen_flags: <defaults>
</compile_context>

<pallas_src>
import functools

import jax
import jax.numpy as jnp
from jax import lax
from jax.experimental import pallas as pl
from jax.experimental.pallas import tpu as pltpu


def _physics_loss_kernel(pred_ref, out_ref, *, tb, batch, seq_len,
                         c_mono, c_bt, c_decay):
    """One batch tile: (tb, T) -> scalar partial, broadcast into a lane-dense block."""
    i = pl.program_id(0)

    # In-kernel cast (free on VPU); HBM traffic stays at the input's native width.
    p = pred_ref[...].astype(jnp.float32)                      # (tb, T)

    # Mask padded remainder rows with an in-range constant (0.5): every loss term
    # (upper/lower bound ReLUs and both finite-difference terms) is exactly 0 for them.
    row_ids = i * tb + lax.broadcasted_iota(jnp.int32, (tb, seq_len), 0)
    p = jnp.where(row_ids < batch, p, jnp.float32(0.5))

    # Capacity bound terms: relu(p - 1.2) and relu(0.1 - p).
    partial = (jnp.sum(jnp.maximum(p - 1.2, 0.0))
               + jnp.sum(jnp.maximum(0.1 - p, 0.0))) * c_bt

    if seq_len > 1:
        d1 = p[:, 1:] - p[:, :-1]                              # (tb, T-1) first diff
        partial = partial + jnp.sum(jnp.maximum(d1, 0.0)) * c_mono
        if seq_len > 2:
            # Second difference reuses the first difference (no extra (B,T) pass).
            d2 = d1[:, 1:] - d1[:, :-1]                        # (tb, T-2)
            partial = partial + jnp.sum(
                jnp.maximum(jnp.abs(d2) - 0.05, 0.0)) * c_decay

    # Lane-dense, fully aligned (1, 8, 128) store -> unmasked vst; wrapper reduces.
    out_ref[...] = jnp.full((1, 8, 128), partial, dtype=jnp.float32)


def physics_loss(predictions, inputs=None, physics_weight=0.1, max_rows_per_tile=None):
    """Pallas implementation of PhysicsLoss.forward. `inputs` is unused (matches PyTorch)."""
    del inputs  # unused by the PyTorch module's forward
    B, T = predictions.shape
    itemsize = predictions.dtype.itemsize

    # Batch-tile size: multiple of 8, sized so one double-buffered input tile stays
    # ~<= 4 MiB (safe under the v7x 32 MiB scoped-VMEM default; v5e/v6e have more).
    target_bytes = 4 * 1024 * 1024
    rows = max(8, min(2048, (target_bytes // max(1, T * itemsize)) // 8 * 8))
    if max_rows_per_tile is not None:
        rows = max(8, (max_rows_per_tile // 8) * 8)
    tb = B if B <= rows else rows                 # tb == B (full dim) or a multiple of 8
    num_tiles = pl.cdiv(B, tb)

    # Fold all mean normalizers and physics_weight into Python-side constants.
    pw = float(physics_weight)
    c_bt = pw / float(B * T)
    c_mono = pw / float(B * (T - 1)) if T > 1 else 0.0
    c_decay = 0.5 * pw / float(B * (T - 2)) if T > 2 else 0.0

    kernel = functools.partial(
        _physics_loss_kernel, tb=tb, batch=B, seq_len=T,
        c_mono=c_mono, c_bt=c_bt, c_decay=c_decay)

    partials = pl.pallas_call(
        kernel,
        out_shape=jax.ShapeDtypeStruct((num_tiles, 8, 128), jnp.float32),
        grid_spec=pltpu.PrefetchScalarGridSpec(
            num_scalar_prefetch=0,
            grid=(num_tiles,),
            in_specs=[pl.BlockSpec((tb, T), lambda i: (i, 0))],
            out_specs=pl.BlockSpec((1, 8, 128), lambda i: (i, 0, 0)),
        ),
        compiler_params=pltpu.CompilerParams(
            dimension_semantics=("parallel",)),
        cost_estimate=pl.CostEstimate(
            flops=10 * B * T,
            transcendentals=0,
            bytes_accessed=B * T * itemsize + num_tiles * 8 * 128 * 4),
    )(predictions)

    # Tiny final reduction over per-tile partials (one f32 per tile).
    return jnp.sum(partials[:, 0, 0])


def physics_loss_ref(predictions, physics_weight=0.1):
    """Pure-JAX reference mirroring the PyTorch forward."""
    p = predictions.astype(jnp.float32)
    loss = jnp.float32(0.0)
    if p.shape[1] > 1:
        loss += jnp.mean(jax.nn.relu(p[:, 1:] - p[:, :-1]))
    loss += jnp.mean(jax.nn.relu(p - 1.2)) + jnp.mean(jax.nn.relu(-p + 0.1))
    if p.shape[1] > 2:
        decay = jnp.abs(p[:, 2:] - 2.0 * p[:, 1:-1] + p[:, :-2])
        loss += 0.5 * jnp.mean(jax.nn.relu(decay - 0.05))
    return physics_weight * loss


if __name__ == "__main__":
    key = jax.random.PRNGKey(0)
    k1, k2, k3 = jax.random.split(key, 3)

    # Case 1: shapes implied by the module (batch=2, prediction horizon=8, 4 aux feats).
    B, T, F_in = 2, 8, 4
    preds = jax.random.uniform(k1, (B, T), jnp.float32, minval=0.0, maxval=1.5)
    aux_inputs = jax.random.normal(k2, (B, T, F_in), jnp.float32)   # unused (as in PyTorch)
    out = jax.block_until_ready(physics_loss(preds, aux_inputs, physics_weight=0.1))
    ref = physics_loss_ref(preds, physics_weight=0.1)
    assert jnp.allclose(out, ref, rtol=1e-5, atol=1e-6), (out, ref)

    # Case 1b: bf16 predictions — no wrapper up-cast, kernel casts in-register.
    preds_bf16 = preds.astype(jnp.bfloat16)
    out_bf16 = jax.block_until_ready(physics_loss(preds_bf16, aux_inputs, physics_weight=0.1))
    ref_bf16 = physics_loss_ref(preds_bf16, physics_weight=0.1)
    assert jnp.allclose(out_bf16, ref_bf16, rtol=1e-4, atol=1e-5), (out_bf16, ref_bf16)

    # Case 2: multi-tile grid with a non-multiple remainder tile (masking path).
    B2, T2 = 20, 8
    preds2 = jax.random.uniform(k3, (B2, T2), jnp.float32, minval=0.0, maxval=1.5)
    out2 = jax.block_until_ready(
        physics_loss(preds2, physics_weight=0.1, max_rows_per_tile=8))
    ref2 = physics_loss_ref(preds2, physics_weight=0.1)
    assert jnp.allclose(out2, ref2, rtol=1e-5, atol=1e-6), (out2, ref2)

    print("KERNEL_OK")
</pallas_src>

<mosaic_0001>
module attributes {stable_mosaic.version = 11 : i64} {
  func.func @_physics_loss_kernel(%arg0: i32, %arg1: memref<2x8xf32, #tpu.memory_space<vmem>>, %arg2: memref<1x8x128xf32, #tpu.memory_space<vmem>>) attributes {dimension_semantics = [#tpu.dimension_semantics<parallel>], iteration_bounds = array<i64: 1>, scalar_prefetch = 0 : i64, scratch_operands = 0 : i64, tpu.core_type = #tpu.core_type<tc>, window_params = [{transform_indices = @transform_0, window_bounds = array<i64: 2, 8>}, {transform_indices = @transform_1, window_bounds = array<i64: 1, 8, 128>}]} {
    %c0 = arith.constant 0 : index
    %c0_0 = arith.constant 0 : index
    %0 = vector.load %arg1[%c0, %c0_0] : memref<2x8xf32, #tpu.memory_space<vmem>>, vector<2x8xf32>
    %c2_i32 = arith.constant 2 : i32
    %1 = arith.muli %arg0, %c2_i32 : i32
    %2 = tpu.iota {dimensions = array<i32: 0>} : vector<2x8xi32>
    %3 = vector.broadcast %1 : i32 to vector<2x8xi32>
    %4 = arith.addi %3, %2 : vector<2x8xi32>
    %c2_i32_1 = arith.constant 2 : i32
    %5 = vector.broadcast %c2_i32_1 : i32 to vector<2x8xi32>
    %6 = arith.cmpi slt, %4, %5 : vector<2x8xi32>
    %cst = arith.constant 5.000000e-01 : f32
    %7 = vector.broadcast %cst : f32 to vector<2x8xf32>
    %8 = arith.select %6, %0, %7 : vector<2x8xi1>, vector<2x8xf32>
    %cst_2 = arith.constant 1.200000e+00 : f32
    %9 = vector.broadcast %cst_2 : f32 to vector<2x8xf32>
    %10 = arith.subf %8, %9 : vector<2x8xf32>
    %cst_3 = arith.constant 0.000000e+00 : f32
    %11 = vector.broadcast %cst_3 : f32 to vector<2x8xf32>
    %12 = arith.maximumf %10, %11 : vector<2x8xf32>
    %13 = vector.shape_cast %12 : vector<2x8xf32> to vector<1x2x8xf32>
    %cst_4 = arith.constant dense<0.000000e+00> : vector<1xf32>
    %14 = vector.multi_reduction <add>, %13, %cst_4 [1, 2] : vector<1x2x8xf32> to vector<1xf32>
    %15 = vector.shape_cast %14 : vector<1xf32> to vector<1x1x1xf32>
    %16 = vector.extract %15[0, 0, 0] : f32 from vector<1x1x1xf32>
    %cst_5 = arith.constant 1.000000e-01 : f32
    %17 = vector.broadcast %cst_5 : f32 to vector<2x8xf32>
    %18 = arith.subf %17, %8 : vector<2x8xf32>
    %cst_6 = arith.constant 0.000000e+00 : f32
    %19 = vector.broadcast %cst_6 : f32 to vector<2x8xf32>
    %20 = arith.maximumf %18, %19 : vector<2x8xf32>
    %21 = vector.shape_cast %20 : vector<2x8xf32> to vector<1x2x8xf32>
    %cst_7 = arith.constant dense<0.000000e+00> : vector<1xf32>
    %22 = vector.multi_reduction <add>, %21, %cst_7 [1, 2] : vector<1x2x8xf32> to vector<1xf32>
    %23 = vector.shape_cast %22 : vector<1xf32> to vector<1x1x1xf32>
    %24 = vector.extract %23[0, 0, 0] : f32 from vector<1x1x1xf32>
    %25 = arith.addf %16, %24 : f32
    %cst_8 = arith.constant 6.250000e-03 : f32
    %26 = arith.mulf %25, %cst_8 : f32
    %27 = vector.extract_strided_slice %8 {offsets = [0, 1], sizes = [2, 7], strides = [1, 1]} : vector<2x8xf32> to vector<2x7xf32>
    %28 = vector.extract_strided_slice %8 {offsets = [0, 0], sizes = [2, 7], strides = [1, 1]} : vector<2x8xf32> to vector<2x7xf32>
    %29 = arith.subf %27, %28 : vector<2x7xf32>
    %cst_9 = arith.constant 0.000000e+00 : f32
    %30 = vector.broadcast %cst_9 : f32 to vector<2x7xf32>
    %31 = arith.maximumf %29, %30 : vector<2x7xf32>
    %32 = vector.shape_cast %31 : vector<2x7xf32> to vector<1x2x7xf32>
    %cst_10 = arith.constant dense<0.000000e+00> : vector<1xf32>
    %33 = vector.multi_reduction <add>, %32, %cst_10 [1, 2] : vector<1x2x7xf32> to vector<1xf32>
    %34 = vector.shape_cast %33 : vector<1xf32> to vector<1x1x1xf32>
    %35 = vector.extract %34[0, 0, 0] : f32 from vector<1x1x1xf32>
    %cst_11 = arith.constant 0.00714285718 : f32
    %36 = arith.mulf %35, %cst_11 : f32
    %37 = arith.addf %26, %36 : f32
    %38 = vector.extract_strided_slice %29 {offsets = [0, 1], sizes = [2, 6], strides = [1, 1]} : vector<2x7xf32> to vector<2x6xf32>
    %39 = vector.extract_strided_slice %29 {offsets = [0, 0], sizes = [2, 6], strides = [1, 1]} : vector<2x7xf32> to vector<2x6xf32>
    %40 = arith.subf %38, %39 : vector<2x6xf32>
    %41 = math.absf %40 : vector<2x6xf32>
    %cst_12 = arith.constant 5.000000e-02 : f32
    %42 = vector.broadcast %cst_12 : f32 to vector<2x6xf32>
    %43 = arith.subf %41, %42 : vector<2x6xf32>
    %cst_13 = arith.constant 0.000000e+00 : f32
    %44 = vector.broadcast %cst_13 : f32 to vector<2x6xf32>
    %45 = arith.maximumf %43, %44 : vector<2x6xf32>
    %46 = vector.shape_cast %45 : vector<2x6xf32> to vector<1x2x6xf32>
    %cst_14 = arith.constant dense<0.000000e+00> : vector<1xf32>
    %47 = vector.multi_reduction <add>, %46, %cst_14 [1, 2] : vector<1x2x6xf32> to vector<1xf32>
    %48 = vector.shape_cast %47 : vector<1xf32> to vector<1x1x1xf32>
    %49 = vector.extract %48[0, 0, 0] : f32 from vector<1x1x1xf32>
    %cst_15 = arith.constant 0.00416666688 : f32
    %50 = arith.mulf %49, %cst_15 : f32
    %51 = arith.addf %37, %50 : f32
    %52 = vector.broadcast %51 : f32 to vector<1x8x128xf32>
    %c0_16 = arith.constant 0 : index
    %c0_17 = arith.constant 0 : index
    %c0_18 = arith.constant 0 : index
    %53 = vector.load %arg2[%c0_16, %c0_17, %c0_18] : memref<1x8x128xf32, #tpu.memory_space<vmem>>, vector<1x8x128xf32>
    tpu.vector_store %arg2[%c0_16, %c0_17, %c0_18], %52 {strides = array<i32>} : memref<1x8x128xf32, #tpu.memory_space<vmem>>, vector<1x8x128xf32>,
    return
  }
  func.func @transform_0(%arg0: i32) -> (i32, i32) {
    %c0_i32 = arith.constant 0 : i32
    %c0_i32_0 = arith.constant 0 : i32
    return %arg0, %c0_i32 : i32, i32
  }
  func.func @transform_1(%arg0: i32) -> (i32, i32, i32) {
    %c0_i32 = arith.constant 0 : i32
    %c0_i32_0 = arith.constant 0 : i32
    %c0_i32_1 = arith.constant 0 : i32
    return %arg0, %c0_i32, %c0_i32_0 : i32, i32, i32
  }
}

</mosaic_0001>

<bundles_post_ra>
// kernel: tpu_custom_call.1
= control target key start
LH: loop header
LB: loop body
LE: loop exit
PB: predicated region body
PF: predicated region fallthrough
CT: control target
= control target key end

     0   :  { %6 = vsyncpa [#allocation3], 0  ;;  %s213_s0 = inlined_call_operand.hbm [shape: f32[2,8], index: 0, kind: input, shape index: {}]   ;;  %s214_s1 = inlined_call_operand.hbm [shape: f32[1,8,128], index: 1, kind: output, shape index: {}]  }
   0x1   :  { %7 = vsyncpa [#allocation4], 0  ;;  %s13_s8 = sshll.u32 %s213_s0, 4  ;;  %s192_s9 = smov [#allocation2]   ;;  %s14_s8 = int_to_ptr.hbm [resolvable:$true] %s13_s8 }
   0x2   :  { %s15_s10 = sshll.u32 %s192_s9, 4  ;;  %s16_s10 = int_to_ptr.vmem [resolvable:$true] %s15_s10 }
   0x3   :  { %18 = dma.hbm_to_vmem [thread:$0]  %s14_s8, 32, %s16_s10, [#allocation3]  }
   0x4   :  { %188 = dma.done.wait [#allocation3], 32  }
   0x5   :  { %189 = vsyncadd [#allocation3], 4294967264  ;;  %v25_v0 = vlaneseq  ;;  %v23_v2 = vld [vmem:[#allocation2] sm:$0x3]  ;;  %s193_s11 = smov 1   ;;  %vm33_vm1 = vcmask 58368  }
   0x6   :  { %s194_s0 = smov 127   ;;  %vm68_vm2 = vcmask 50176   ;;  %s195_s12 = smov 126   ;;  %vm93_vm3 = vcmask 41984  }
   0x7   :  { %v26_v1 = vshrl.u32 %v25_v0, 7  ;;  %s196_s19 = smov [#allocation5]   ;;  %s115_s24 = sshll.u32 %s214_s1, 4  ;;  %s116_s24 = int_to_ptr.hbm [resolvable:$true] %s115_s24 }
   0x8   :  { %s113_s20 = sshll.u32 %s196_s19, 4  ;;  %s114_s20 = int_to_ptr.vmem [resolvable:$true] %s113_s20 }
   0x9   :  { %vm29_vm0 = vcmp.lt.s32.totalorder %v26_v1, 2 }
   0xa   :  { %v30_v3 = vsel %vm29_vm0, %v23_v2, 0.5 }
   0xb   :  { %59 = vrot.lane.b32.xlu0 %v30_v3, %s193_s11  ;;  %v125_v4 = vadd.f32 -1.2, %v30_v3  ;;  %v44_v10 = vsub.f32 0.1, %v30_v3 }
   0xd   :  { %v32_v5 = vmax.f32 %v125_v4, 0.0  ;;  %v45_v11 = vmax.f32 %v44_v10, 0.0 }
   0xf   :  { %v34_v6 = vsel %vm33_vm1, %v32_v5, 0.0  ;;  %v46_v12 = vsel %vm33_vm1, %v45_v11, 0.0 }
  0x10   :  { %35 = vadd.xlane.f32.xlu2 %v34_v6 }
  0x18   :  { %47 = vadd.xlane.f32.xlu2 %v46_v12 }
  0x7d   :  { %v60_v7 = vpop.permute.xlu0 %59 }
  0x7e   :  { %v62_v8 = vsub.f32 %v30_v3, %v60_v7 }
  0x80   :  { %82 = vrot.lane.b32.xlu0 %v62_v8, %s193_s11  ;;  %v63_v9 = vmax.f32 %v62_v8, 0.0 }
  0x82   :  { %65 = vrot.lane.b32.xlu1 %v63_v9, %s194_s0 }
  0x83   :  { %v36_v20 = vpop.xlane.xlu2 %35 }
  0x84   :  { %v37_v21 = vrot.slane %v36_v20, 4 }
  0x86   :  { %v38_v22 = vadd.f32 %v37_v21, %v36_v20 }
  0x88   :  { %v39_v25 = vrot.slane %v38_v22, 2 }
  0x8a   :  { %v40_v29 = vadd.f32 %v39_v25, %v38_v22 }
  0x8b   :  { %v48_v23 = vpop.xlane.xlu2 %47 }
  0x8c   :  { %v49_v24 = vrot.slane %v48_v23, 4  ;;  %v41_v30 = vrot.slane %v40_v29, 1 }
  0x8e   :  { %v50_v26 = vadd.f32 %v49_v24, %v48_v23  ;;  %v42_v32 = vadd.f32 %v41_v30, %v40_v29 }
  0x90   :  { %v51_v27 = vrot.slane %v50_v26, 2  ;;  %127 = vpush %v42_v32 }
  0x92   :  { %v52_v28 = vadd.f32 %v51_v27, %v50_v26 }
  0x94   :  { %v53_v31 = vrot.slane %v52_v28, 1 }
  0x96   :  { %v54_v33 = vadd.f32 %v53_v31, %v52_v28 }
  0x98   :  { %129 = vpush %v54_v33 }
  0xc1   :  { %s128_s13 = spop %127 }
  0xc9   :  { %s130_s14 = spop %129 }
  0xca   :  { %s56_s15 = sadd.f32 %s130_s14, %s128_s13 }
  0xcc   :  { %s57_s17 = smul.f32 0.00625, %s56_s15 }
  0xf2   :  { %v83_v13 = vpop.permute.xlu0 %82 }
  0xf3   :  { %v85_v14 = vsub.f32 %v62_v8, %v83_v13 }
  0xf4   :  { %v66_v15 = vpop.permute.xlu1 %65 }
  0xf5   :  { %v86_v16 = vand.u32 2147483647, %v85_v14  ;;  %v69_v17 = vsel %vm68_vm2, %v66_v15, 0.0 }
  0xf6   :  { %70 = vadd.xlane.f32.xlu0 %v69_v17 }
  0xf7   :  { %v126_v18 = vadd.f32 -0.05, %v86_v16 }
  0xf9   :  { %v88_v19 = vmax.f32 %v126_v18, 0.0 }
  0xfb   :  { %90 = vrot.lane.b32.xlu1 %v88_v19, %s195_s12 }
 0x169   :  { %v71_v34 = vpop.xlane.xlu0 %70 }
 0x16a   :  { %v72_v35 = vrot.slane %v71_v34, 4 }
 0x16c   :  { %v73_v36 = vadd.f32 %v72_v35, %v71_v34 }
 0x16d   :  { %v91_v37 = vpop.permute.xlu1 %90 }
 0x16e   :  { %v74_v38 = vrot.slane %v73_v36, 2  ;;  %v94_v39 = vsel %vm93_vm3, %v91_v37, 0.0 }
 0x16f   :  { %95 = vadd.xlane.f32.xlu1 %v94_v39 }
 0x170   :  { %v75_v40 = vadd.f32 %v74_v38, %v73_v36 }
 0x172   :  { %v76_v41 = vrot.slane %v75_v40, 1 }
 0x174   :  { %v77_v42 = vadd.f32 %v76_v41, %v75_v40 }
 0x176   :  { %131 = vpush %v77_v42 }
 0x1a7   :  { %s132_s16 = spop %131 }
 0x1a8   :  { %s79_s18 = smul.f32 0.007142857, %s132_s16 }
 0x1aa   :  { %s80_s25 = sadd.f32 %s79_s18, %s57_s17 }
 0x1e2   :  { %v96_v43 = vpop.xlane.xlu1 %95 }
 0x1e3   :  { %v97_v44 = vrot.slane %v96_v43, 4 }
 0x1e5   :  { %v98_v45 = vadd.f32 %v97_v44, %v96_v43 }
 0x1e7   :  { %v99_v46 = vrot.slane %v98_v45, 2 }
 0x1e9   :  { %v100_v47 = vadd.f32 %v99_v46, %v98_v45 }
 0x1eb   :  { %v101_v48 = vrot.slane %v100_v47, 1 }
 0x1ed   :  { %v102_v49 = vadd.f32 %v101_v48, %v100_v47 }
 0x1ef   :  { %133 = vpush %v102_v49 }
 0x220   :  { %s134_s21 = spop %133 }
 0x221   :  { %s104_s26 = smul.f32 0.004166667, %s134_s21 }
 0x223   :  { %s105_s27 = sadd.f32 %s104_s26, %s80_s25 }
 0x225   :  { %v106_v50 = vstv %s105_s27 }
 0x226   :  { %107 = vst [vmem:[#allocation5] sm:$0xff] %v106_v50 }
 0x227   :  { %118 = dma.vmem_to_hbm [thread:$0]  %s114_s20, 128, %s116_s24, [#allocation4]  }
 0x228   :  { %190 = dma.done.wait [#allocation4], 128  }
 0x229   :  { %191 = vsyncadd [#allocation4], 4294967168 }
 0x22a   :  { %123 = vsyncpa [#allocation3], 1 }
 0x22b   :  { %124 = vsyncpa [#allocation4], 1 }

</bundles_post_ra>
